<compile_context>
chip_gen: v7x
topology: tpu7x:2x2x1
jax: 0.10.0
libtpu: 0.0.40
codegen_flags: <defaults>
</compile_context>

<pallas_src>
import functools
import math

import jax
import jax.numpy as jnp
from jax.experimental import pallas as pl
from jax.experimental.pallas import tpu as pltpu

_M_FLOOR = -1e30  # finite floor for the running max (NaN robustness on masked rows)


def _vmem_capacity_bytes():
    try:
        info = pltpu.get_tpu_info()
        cap = getattr(info, "vmem_capacity_bytes", None)
        if cap:
            return int(cap)
    except Exception:
        pass
    return 64 * 1024 * 1024  # conservative (v7x-sized) fallback


def _vmem_limit_bytes(capacity):
    # Leave headroom for compiler-internal scratch.  128 MiB parts (v5e/v6e)
    # -> 96 MiB; 64 MiB parts (v7x) -> 48 MiB.
    return int(max(min(capacity - 16 * 1024 * 1024, 96 * 1024 * 1024),
                   32 * 1024 * 1024))


def _qkv_proj_kernel(x_ref, w_in_ref, b_in_ref, q_ref, k_ref, v_ref):
    """x tile (1, ts, D) -> Q/K/V tiles (1, H, ts, d_head) (head-major).

    The softmax scale is already folded into the Q columns of w_in / b_in
    host-side, so no extra scaling happens here or in the attention loop.
    """
    n_heads, d_head = q_ref.shape[1], q_ref.shape[3]
    ts = x_ref.shape[1]

    x = x_ref[0]                                            # (ts, D), native dtype
    # Single full-width matmul (best MXU fill); f32 accumulation.
    qkv = jnp.dot(x, w_in_ref[...], preferred_element_type=jnp.float32)
    qkv = (qkv + b_in_ref[...].astype(jnp.float32)).astype(q_ref.dtype)  # (ts, 3D)

    # One relayout to head-major instead of 3*H cross-lane slices + narrow
    # stores: (ts, 3D) -> (ts, 3H, dh) -> (3H, ts, dh), then 3 bulk stores.
    qkv = qkv.reshape(ts, 3 * n_heads, d_head)
    qkv = pltpu.einshape("tgd->gtd", qkv)                   # (3H, ts, dh)
    q_ref[0] = qkv[:n_heads]
    k_ref[0] = qkv[n_heads:2 * n_heads]
    v_ref[0] = qkv[2 * n_heads:]


def _flash_attn_kernel(q_ref, k_ref, v_ref, w_out_ref, b_out_ref, o_ref,
                       m_sc, l_sc, acc_sc, *, causal):
    """Online-softmax attention over kv tiles with fused out_proj."""
    i = pl.program_id(1)                       # query-tile index
    j = pl.program_id(2)                       # kv-tile index (reduction axis)
    nk = pl.num_programs(2)

    n_heads, tq, d_head = acc_sc.shape
    tk = k_ref.shape[2]

    @pl.when(j == 0)
    def _init():
        m_sc[...] = jnp.full(m_sc.shape, -jnp.inf, dtype=jnp.float32)
        l_sc[...] = jnp.zeros(l_sc.shape, dtype=jnp.float32)
        acc_sc[...] = jnp.zeros(acc_sc.shape, dtype=jnp.float32)

    def update(apply_mask):
        q = q_ref[0]                                       # (H, tq, dh)
        k = k_ref[0]                                       # (H, tk, dh)
        v = v_ref[0]                                       # (H, tk, dh)

        # All heads in one batched MXU matmul; f32 accumulation.  The softmax
        # scale was folded into Q at projection time.
        s = jnp.einsum("hqd,hkd->hqk", q, k,
                       preferred_element_type=jnp.float32)  # (H, tq, tk)

        if apply_mask:
            # Only diagonal (partially masked) tiles build the mask.
            row = i * tq + jax.lax.broadcasted_iota(jnp.int32, (tq, tk), 0)
            col = j * tk + jax.lax.broadcasted_iota(jnp.int32, (tq, tk), 1)
            s = jnp.where((col > row)[None, :, :], -jnp.inf, s)

        m_prev = m_sc[...]                                 # (H, tq, 1)
        m_new = jnp.maximum(m_prev, jnp.max(s, axis=-1, keepdims=True))
        if apply_mask:
            # NaN-robust even if a row of this tile is fully masked.
            m_new = jnp.maximum(m_new, _M_FLOOR)
        alpha = jnp.exp(m_prev - m_new)
        p = jnp.exp(s - m_new)                             # (H, tq, tk) f32

        l_sc[...] = alpha * l_sc[...] + jnp.sum(p, axis=-1, keepdims=True)
        acc_sc[...] = alpha * acc_sc[...] + jnp.einsum(
            "hqk,hkd->hqd", p.astype(v.dtype), v,
            preferred_element_type=jnp.float32)
        m_sc[...] = m_new

    if causal:
        q_lo = i * tq
        q_hi = i * tq + (tq - 1)
        k_lo = j * tk
        k_hi = j * tk + (tk - 1)

        # Fully visible (past) tile: no mask math at all.
        @pl.when(k_hi <= q_lo)
        def _full():
            update(apply_mask=False)

        # Diagonal tile: build the mask only here.
        @pl.when(jnp.logical_and(k_hi > q_lo, k_lo <= q_hi))
        def _diag():
            update(apply_mask=True)

        # Fully masked (future) tiles: compute skipped; their K/V index_map is
        # clamped host-side so no DMA is issued for them either.
    else:
        update(apply_mask=False)

    @pl.when(j == nk - 1)
    def _finalize():
        # Deferred softmax normalization: one reciprocal per (head, row),
        # EUP approximation refined with a single Newton step.
        l = l_sc[...]
        inv = pl.reciprocal(l, approx=True)
        inv = inv * (2.0 - l * inv)
        attn = acc_sc[...] * inv                           # (H, tq, dh) f32

        # Single (tq, D) x (D, D) out_proj matmul (full MXU contraction fill)
        # instead of H matmuls with K=d_head; the relayout cost is amortized
        # over all kv steps.
        attn = pltpu.einshape("hqd->qhd", attn)            # (tq, H, dh)
        attn = attn.reshape(tq, n_heads * d_head)          # (tq, D)
        out = jnp.dot(attn.astype(w_out_ref.dtype), w_out_ref[...],
                      preferred_element_type=jnp.float32)
        out = out + b_out_ref[...].astype(jnp.float32)
        o_ref[0] = out.astype(o_ref.dtype)


def self_attention(x, w_in, b_in, w_out, b_out, *, n_heads, causal_mask=False,
                   q_block=None, kv_block=None, s_block=None):
    """x: (B, S, D); w_in: (D, 3D); b_in: (1, 3D); w_out: (D, D); b_out: (1, D)."""
    B, S, D = x.shape
    assert D % n_heads == 0
    d_head = D // n_heads

    vmem_cap = _vmem_capacity_bytes()
    vmem_limit = _vmem_limit_bytes(vmem_cap)
    big_vmem = vmem_cap >= 128 * 1024 * 1024

    # Per-generation defaults: 512-wide tiles on 128 MiB parts (v5e/v6e),
    # tq=512 / tk=256 on 64 MiB parts (v7x).
    if s_block is None:
        s_block = 512
    if q_block is None:
        q_block = 512
    if kv_block is None:
        kv_block = 512 if big_vmem else 256

    ts = min(s_block, S)
    tq = min(q_block, S)
    tk = min(kv_block, S)
    # TODO(synk): support ragged S (pad + mask) instead of requiring divisibility.
    assert S % ts == 0 and S % tq == 0 and S % tk == 0

    # Fold the softmax scale into the Q part of the in-projection so the inner
    # kv loop never multiplies the (H, tq, tk) score tile.
    scale = 1.0 / math.sqrt(d_head)
    w_in_s = w_in.at[:, :D].multiply(scale)
    b_in_s = b_in.at[:, :D].multiply(scale)

    # ---- kernel 1: tiled qkv projection, head-major output layout ----
    # TODO(synk): for very large D (>~1.5k f32) tile the 3D output columns with
    # a third grid axis so the resident, double-buffered w_in block also fits
    # v7x's 64 MiB VMEM.
    qkv_struct = jax.ShapeDtypeStruct((B, n_heads, S, d_head), x.dtype)
    head_spec = pl.BlockSpec((1, n_heads, ts, d_head), lambda b, s: (b, 0, s, 0))

    q, k, v = pl.pallas_call(
        _qkv_proj_kernel,
        out_shape=(qkv_struct, qkv_struct, qkv_struct),
        grid=(B, S // ts),
        in_specs=[
            pl.BlockSpec((1, ts, D), lambda b, s: (b, s, 0)),      # x tile
            pl.BlockSpec((D, 3 * D), lambda b, s: (0, 0)),         # w_in (resident)
            pl.BlockSpec((1, 3 * D), lambda b, s: (0, 0)),         # b_in
        ],
        out_specs=(head_spec, head_spec, head_spec),
        compiler_params=pltpu.CompilerParams(
            dimension_semantics=("parallel", "parallel"),
            vmem_limit_bytes=vmem_limit),
    )(x, w_in_s, b_in_s)

    # ---- kernel 2: flash attention + fused out_proj ----
    if causal_mask:
        # Clamp the kv block index for fully-masked (future) tiles so the
        # BlockSpec pipeline re-uses the previous block instead of DMAing K/V
        # data the kernel will skip anyway.
        def kv_index(b, i, j):
            return (b, 0, jnp.minimum(j, (i * tq + tq - 1) // tk), 0)
    else:
        def kv_index(b, i, j):
            return (b, 0, j, 0)

    # NOTE(v7x megacore): work is sharded over the two "parallel" axes
    # (B, S/tq); keep B*(S/tq) >= 2 (and preferably even) before growing tq.
    # TODO(synk): optionally pipeline_mode=pl.Buffered(3) on K/V when H*d_head
    # is small and the per-step compute does not cover the DMA.
    kernel = functools.partial(_flash_attn_kernel, causal=causal_mask)

    return pl.pallas_call(
        kernel,
        out_shape=jax.ShapeDtypeStruct((B, S, D), x.dtype),
        grid=(B, S // tq, S // tk),
        in_specs=[
            pl.BlockSpec((1, n_heads, tq, d_head), lambda b, i, j: (b, 0, i, 0)),
            pl.BlockSpec((1, n_heads, tk, d_head), kv_index),
            pl.BlockSpec((1, n_heads, tk, d_head), kv_index),
            pl.BlockSpec((D, D), lambda b, i, j: (0, 0)),          # w_out (resident)
            pl.BlockSpec((1, D), lambda b, i, j: (0, 0)),          # b_out
        ],
        out_specs=pl.BlockSpec((1, tq, D), lambda b, i, j: (b, i, 0)),
        scratch_shapes=[
            pltpu.VMEM((n_heads, tq, 1), jnp.float32),       # m: running max
            pltpu.VMEM((n_heads, tq, 1), jnp.float32),       # l: running denom
            pltpu.VMEM((n_heads, tq, d_head), jnp.float32),  # acc: unnormalized PV
        ],
        compiler_params=pltpu.CompilerParams(
            dimension_semantics=("parallel", "parallel", "arbitrary"),
            vmem_limit_bytes=vmem_limit),
    )(q, k, v, w_out, b_out)


def _reference(x, w_in, b_in, w_out, b_out, *, n_heads, causal_mask=False):
    # Pure-JAX mirror of the PyTorch forward, for validation.
    B, S, D = x.shape
    d_head = D // n_heads
    qkv = x @ w_in + b_in[0]
    q, k, v = jnp.split(qkv, 3, axis=-1)

    def heads(t):  # (B, S, D) -> (B, H, S, d_head)
        return t.reshape(B, S, n_heads, d_head).transpose(0, 2, 1, 3)

    q, k, v = heads(q), heads(k), heads(v)
    w = jnp.einsum("bhqd,bhkd->bhqk", q, k)
    if causal_mask:
        mask = jnp.triu(jnp.ones((S, S), dtype=bool), 1)
        w = jnp.where(mask, -jnp.inf, w)
    w = w / math.sqrt(d_head)
    w = jax.nn.softmax(w, axis=-1)
    o = jnp.einsum("bhqk,bhkd->bhqd", w, v)
    o = o.transpose(0, 2, 1, 3).reshape(B, S, D)
    return o @ w_out + b_out[0]


if __name__ == "__main__":
    # Small shapes consistent with (batch, seq, d_embed); S=16 with block=8 so
    # the multi-tile online-softmax / diagonal-mask / causal-skip paths run.
    B, S, D = 2, 16, 32
    n_heads = 4

    key = jax.random.PRNGKey(0)
    kx, k1, k2, k3, k4 = jax.random.split(key, 5)

    x = jax.random.normal(kx, (B, S, D), dtype=jnp.float32)

    # Deterministic parameter init (PyTorch Linear-style uniform bounds).
    bound = 1.0 / math.sqrt(D)
    w_in = jax.random.uniform(k1, (D, 3 * D), minval=-bound, maxval=bound,
                              dtype=jnp.float32)
    b_in = jax.random.uniform(k2, (1, 3 * D), minval=-bound, maxval=bound,
                              dtype=jnp.float32)
    w_out = jax.random.uniform(k3, (D, D), minval=-bound, maxval=bound,
                               dtype=jnp.float32)
    b_out = jax.random.uniform(k4, (1, D), minval=-bound, maxval=bound,
                               dtype=jnp.float32)

    ref = _reference(x, w_in, b_in, w_out, b_out,
                     n_heads=n_heads, causal_mask=False)
    ref_c = _reference(x, w_in, b_in, w_out, b_out,
                       n_heads=n_heads, causal_mask=True)

    # Multi-tile, non-causal.
    out = jax.block_until_ready(
        self_attention(x, w_in, b_in, w_out, b_out, n_heads=n_heads,
                       causal_mask=False, q_block=8, kv_block=8, s_block=8))
    assert out.shape == (B, S, D)
    assert jnp.allclose(out, ref, atol=1e-3, rtol=1e-3), "mismatch vs reference"

    # Multi-tile, causal (exercises clamped index_map + diagonal-only mask).
    out_c = jax.block_until_ready(
        self_attention(x, w_in, b_in, w_out, b_out, n_heads=n_heads,
                       causal_mask=True, q_block=8, kv_block=8, s_block=8))
    assert jnp.allclose(out_c, ref_c, atol=1e-3, rtol=1e-3), "causal mismatch"

    # Default (auto-derived) tile sizes, single-tile path.
    out_d = jax.block_until_ready(
        self_attention(x, w_in, b_in, w_out, b_out, n_heads=n_heads,
                       causal_mask=False))
    assert jnp.allclose(out_d, ref, atol=1e-3, rtol=1e-3), "default-tile mismatch"

    print("KERNEL_OK")
</pallas_src>

<mosaic_0001>
module attributes {stable_mosaic.version = 11 : i64} {
  func.func @_qkv_proj_kernel(%arg0: i32, %arg1: i32, %arg2: memref<1x8x32xf32, #tpu.memory_space<vmem>>, %arg3: memref<32x96xf32, #tpu.memory_space<vmem>>, %arg4: memref<1x96xf32, #tpu.memory_space<vmem>>, %arg5: memref<1x4x8x8xf32, #tpu.memory_space<vmem>>, %arg6: memref<1x4x8x8xf32, #tpu.memory_space<vmem>>, %arg7: memref<1x4x8x8xf32, #tpu.memory_space<vmem>>) attributes {dimension_semantics = [#tpu.dimension_semantics<parallel>, #tpu.dimension_semantics<parallel>], iteration_bounds = array<i64: 2, 2>, scalar_prefetch = 0 : i64, scratch_operands = 0 : i64, tpu.core_type = #tpu.core_type<tc>, window_params = [{transform_indices = @transform_0, window_bounds = array<i64: 1, 8, 32>}, {pipeline_mode = #tpu.pipeline_mode<synchronous>, transform_indices = @transform_1, window_bounds = array<i64: 32, 96>}, {pipeline_mode = #tpu.pipeline_mode<synchronous>, transform_indices = @transform_2, window_bounds = array<i64: 1, 96>}, {transform_indices = @transform_3, window_bounds = array<i64: 1, 4, 8, 8>}, {transform_indices = @transform_4, window_bounds = array<i64: 1, 4, 8, 8>}, {transform_indices = @transform_5, window_bounds = array<i64: 1, 4, 8, 8>}]} {
    %c0 = arith.constant 0 : index
    %c0_0 = arith.constant 0 : index
    %c0_1 = arith.constant 0 : index
    %0 = vector.load %arg2[%c0, %c0_0, %c0_1] : memref<1x8x32xf32, #tpu.memory_space<vmem>>, vector<1x8x32xf32>
    %1 = vector.shape_cast %0 : vector<1x8x32xf32> to vector<8x32xf32>
    %c0_2 = arith.constant 0 : index
    %c0_3 = arith.constant 0 : index
    %2 = vector.load %arg3[%c0_2, %c0_3] : memref<32x96xf32, #tpu.memory_space<vmem>>, vector<32x96xf32>
    %cst = arith.constant dense<0.000000e+00> : vector<8x96xf32>
    %3 = tpu.matmul %1, %2, %cst {dimension_numbers = #tpu.dot_dimension_numbers<[1], [0], [0], [1], [0, 0, 1, 1], [], []>} : vector<8x32xf32>, vector<32x96xf32>, vector<8x96xf32> -> vector<8x96xf32>
    %c0_4 = arith.constant 0 : index
    %c0_5 = arith.constant 0 : index
    %4 = vector.load %arg4[%c0_4, %c0_5] : memref<1x96xf32, #tpu.memory_space<vmem>>, vector<1x96xf32>
    %5 = vector.broadcast %4 : vector<1x96xf32> to vector<8x96xf32>
    %6 = arith.addf %3, %5 : vector<8x96xf32>
    %7 = vector.shape_cast %6 : vector<8x96xf32> to vector<8x12x8xf32>
    %8 = tpu.transpose %7, [1, 0, 2] : vector<8x12x8xf32> -> vector<12x8x8xf32>
    %9 = vector.extract_strided_slice %8 {offsets = [0, 0, 0], sizes = [4, 8, 8], strides = [1, 1, 1]} : vector<12x8x8xf32> to vector<4x8x8xf32>
    %c0_6 = arith.constant 0 : index
    %c0_7 = arith.constant 0 : index
    %c0_8 = arith.constant 0 : index
    %c0_9 = arith.constant 0 : index
    %10 = vector.load %arg5[%c0_6, %c0_7, %c0_8, %c0_9] : memref<1x4x8x8xf32, #tpu.memory_space<vmem>>, vector<1x4x8x8xf32>
    %11 = vector.shape_cast %10 : vector<1x4x8x8xf32> to vector<4x8x8xf32>
    %12 = vector.shape_cast %9 : vector<4x8x8xf32> to vector<1x4x8x8xf32>
    tpu.vector_store %arg5[%c0_6, %c0_7, %c0_8, %c0_9], %12 {strides = array<i32>} : memref<1x4x8x8xf32, #tpu.memory_space<vmem>>, vector<1x4x8x8xf32>,
    %13 = vector.extract_strided_slice %8 {offsets = [4, 0, 0], sizes = [4, 8, 8], strides = [1, 1, 1]} : vector<12x8x8xf32> to vector<4x8x8xf32>
    %c0_10 = arith.constant 0 : index
    %c0_11 = arith.constant 0 : index
    %c0_12 = arith.constant 0 : index
    %c0_13 = arith.constant 0 : index
    %14 = vector.load %arg6[%c0_10, %c0_11, %c0_12, %c0_13] : memref<1x4x8x8xf32, #tpu.memory_space<vmem>>, vector<1x4x8x8xf32>
    %15 = vector.shape_cast %14 : vector<1x4x8x8xf32> to vector<4x8x8xf32>
    %16 = vector.shape_cast %13 : vector<4x8x8xf32> to vector<1x4x8x8xf32>
    tpu.vector_store %arg6[%c0_10, %c0_11, %c0_12, %c0_13], %16 {strides = array<i32>} : memref<1x4x8x8xf32, #tpu.memory_space<vmem>>, vector<1x4x8x8xf32>,
    %17 = vector.extract_strided_slice %8 {offsets = [8, 0, 0], sizes = [4, 8, 8], strides = [1, 1, 1]} : vector<12x8x8xf32> to vector<4x8x8xf32>
    %c0_14 = arith.constant 0 : index
    %c0_15 = arith.constant 0 : index
    %c0_16 = arith.constant 0 : index
    %c0_17 = arith.constant 0 : index
    %18 = vector.load %arg7[%c0_14, %c0_15, %c0_16, %c0_17] : memref<1x4x8x8xf32, #tpu.memory_space<vmem>>, vector<1x4x8x8xf32>
    %19 = vector.shape_cast %18 : vector<1x4x8x8xf32> to vector<4x8x8xf32>
    %20 = vector.shape_cast %17 : vector<4x8x8xf32> to vector<1x4x8x8xf32>
    tpu.vector_store %arg7[%c0_14, %c0_15, %c0_16, %c0_17], %20 {strides = array<i32>} : memref<1x4x8x8xf32, #tpu.memory_space<vmem>>, vector<1x4x8x8xf32>,
    return
  }
  func.func @transform_0(%arg0: i32, %arg1: i32) -> (i32, i32, i32) {
    %c0_i32 = arith.constant 0 : i32
    %c0_i32_0 = arith.constant 0 : i32
    return %arg0, %arg1, %c0_i32 : i32, i32, i32
  }
  func.func @transform_1(%arg0: i32, %arg1: i32) -> (i32, i32) {
    %c0_i32 = arith.constant 0 : i32
    %c0_i32_0 = arith.constant 0 : i32
    %c0_i32_1 = arith.constant 0 : i32
    return %c0_i32, %c0_i32_0 : i32, i32
  }
  func.func @transform_2(%arg0: i32, %arg1: i32) -> (i32, i32) {
    %c0_i32 = arith.constant 0 : i32
    %c0_i32_0 = arith.constant 0 : i32
    %c0_i32_1 = arith.constant 0 : i32
    return %c0_i32, %c0_i32_0 : i32, i32
  }
  func.func @transform_3(%arg0: i32, %arg1: i32) -> (i32, i32, i32, i32) {
    %c0_i32 = arith.constant 0 : i32
    %c0_i32_0 = arith.constant 0 : i32
    %c0_i32_1 = arith.constant 0 : i32
    return %arg0, %c0_i32, %arg1, %c0_i32_0 : i32, i32, i32, i32
  }
  func.func @transform_4(%arg0: i32, %arg1: i32) -> (i32, i32, i32, i32) {
    %c0_i32 = arith.constant 0 : i32
    %c0_i32_0 = arith.constant 0 : i32
    %c0_i32_1 = arith.constant 0 : i32
    return %arg0, %c0_i32, %arg1, %c0_i32_0 : i32, i32, i32, i32
  }
  func.func @transform_5(%arg0: i32, %arg1: i32) -> (i32, i32, i32, i32) {
    %c0_i32 = arith.constant 0 : i32
    %c0_i32_0 = arith.constant 0 : i32
    %c0_i32_1 = arith.constant 0 : i32
    return %arg0, %c0_i32, %arg1, %c0_i32_0 : i32, i32, i32, i32
  }
}

</mosaic_0001>

<bundles_post_ra>
// kernel: tpu_custom_call.1
= control target key start
LH: loop header
LB: loop body
LE: loop exit
PB: predicated region body
PF: predicated region fallthrough
CT: control target
= control target key end

     0   :  { %s1795_s0 = inlined_call_operand.hbm [shape: f32[2,16,32], index: 0, kind: input, shape index: {}]   ;;  %s1796_s1 = inlined_call_operand.hbm [shape: f32[32,96], index: 1, kind: input, shape index: {}]   ;;  %s1797_s2 = inlined_call_operand.vmem [shape: f32[1,96], index: 2, kind: input, shape index: {}]   ;;  %s1798_s3 = inlined_call_operand.vmem [shape: f32[2,4,16,8], index: 3, kind: output, shape index: {0}]   ;;  %s1799_s4 = inlined_call_operand.vmem [shape: f32[2,4,16,8], index: 4, kind: output, shape index: {1}]   ;;  %s1800_s5 = inlined_call_operand.vmem [shape: f32[2,4,16,8], index: 5, kind: output, shape index: {2}]  }
   0x1   :  { %1806 = sst [smem:[#allocation12_spill]] %s1796_s1 }
   0x2   :  { %1807 = sst [smem:[#allocation13_spill]] %s1799_s4 }
   0x3   :  { %1808 = sst [smem:[#allocation14_spill]] %s1800_s5 }
   0x4   :  { %11 = vsyncpa [#allocation3], 0 }
   0x5   :  { %13 = vsyncpa [#allocation3 + $0x1], 0 }
   0x6   :  { %14 = vsyncpa [#allocation5], 0  ;;  %s1478_s18 = smov 0   ;;  %s1480_s19 = smov 0  }
   0x7   :  { %s1482_s20 = smov 0   ;;  %s1484_s21 = smov 0  }
   0x8   :  { %s1486_s22 = smov 0   ;;  %s1488_s23 = smov 0  }
   0x9   :  { %s1490_s24 = smov 0   ;;  %s1492_s25 = smov 0  }
   0xa LB: > { %s1139_s26 = sadd.s32 4294967295, %s1426_s25   ;;  %p54_p0 = scmp.ne.s32.totalorder %s1402_s19, %s1398_s18  ;;  %s1426_s25 = sphi %s1492_s25, %s20_s25   ;;  %s1422_s24 = sphi %s1490_s24, %s1830_s24   ;;  %s1418_s23 = sphi %s1488_s23, %s1829_s23   ;;  %s1414_s22 = sphi %s1486_s22, %s1828_s22   ;;  %s1410_s21 = sphi %s1484_s21, %s1827_s21   ;;  %s1406_s20 = sphi %s1482_s20, %s1826_s20   ;;  %s1402_s19 = sphi %s1480_s19, %s1825_s19   ;;  %s1398_s18 = sphi %s1478_s18, %s1824_s18  }
   0xb   : > { %p1520_p1 = scmp.eq.s32.totalorder %s1139_s26, 0  ;;  %p1141_p2 = scmp.ge.s32.totalorder %s1426_s25, 1 }
   0xc   : > { %p191_p3 = scmp.lt.s32.totalorder %s1426_s25, 5  ;;  %s1428_s30 = smov [#allocation4]  }
   0xd   : > { %s1809_s27 = scalar_select %p1520_p1, 1, 0 }
   0xe   : > { %p1528_p4 = por %p1520_p1, %p54_p0  ;;  %p1532_p5 = pnand %p1141_p2, %p191_p3 }
   0xf   : > { %s203_s6 = sshll.u32 %s1428_s30, 4  ;;  %s1813_s1 = sld [smem:[#allocation12_spill]]  ;;  %s204_s6 = int_to_ptr.vmem [resolvable:$true] %s203_s6 }
  0x10   : > { %s1810_s28 = scalar_select %p1528_p4, 1, 0 }
  0x11   : > { %s1811_s29 = scalar_select %p1532_p5, 1, 0 }
  0x12   : > { %p1204_p6 = pneg %p1532_p5 }
  0x14   : > { %p1540_p7 = pnand %p1204_p6, %p1520_p1 }
  0x15   : > { %s1298_s10 = scalar_lea.hbm %s1813_s1, 512 }
  0x16   : > { %p1299_p8 = scmp.ne.s32.totalorder %s1813_s1, %s1298_s10  ;;  %p1300_p9 = pneg %p1540_p7 }
  0x17   : > { %p1305_p12 = scmp.lt.u32.totalorder %s1298_s10, %s1813_s1 }
  0x18   : > { %p1301_p10 = pnand %p1300_p9, %p1299_p8 }
  0x1a   : > { %p1302_p11 = pneg %p1301_p10 }
  0x1c   : > { %p1307_p13 = pnand %p1305_p12, %p1302_p11 }
  0x1e   : > { %1310 = shalt.err (!%p1307_p13)
}
  0x1f   : > { %s1311_s15 = scalar_lea.vmem %s204_s6, 512  ;;  %p1319_p6 = scmp.lt.s32.totalorder %s204_s6, %s204_s6 }
  0x20   : > { %p1312_p0 = scmp.ne.s32.totalorder %s204_s6, %s1311_s15  ;;  %p1320_p1 = scmp.lt.s32.totalorder %s1311_s15, %s1311_s15 }
  0x22   : > { %p1314_p2 = pnand %p1312_p0, %p1300_p9  ;;  %p1321_p4 = por %p1320_p1, %p1319_p6 }
  0x24   : > { %p1315_p3 = pneg %p1314_p2 }
  0x26   : > { %p1322_p5 = pnand %p1321_p4, %p1315_p3 }
  0x28   : > { %1325 = shalt.err (!%p1322_p5)
}
  0x29   : > { %s1429_s16 = smov 128   ;;  %s1430_s17 = smov 8  }
  0x2a   : > { %1207 = dma.hbm_to_vmem [thread:$0]  (!%p1540_p7), %s1813_s1, 512, %s204_s6, [#allocation5], %s1429_s16, %s1429_s16, %s1430_s17  }
  0x2b   : > { %p122_p1 = scmp.eq.s32.totalorder %s1139_s26, 3  ;;  %s29_s8 = sadd.s32 1, %s1418_s23 }
  0x2c   : > { %p30_p4 = scmp.ge.s32.totalorder %s29_s8, 2  ;;  %s32_s9 = sadd.s32 1, %s1422_s24 }
  0x2d   : > { %p48_p5 = scmp.ne.s32.totalorder %s1406_s20, %s1402_s19  ;;  %p49_p8 = scmp.eq.s32.totalorder %s1426_s25, 0 }
  0x2e   : > { %s1832_s8 = smov (%p30_p4, %s29_s8), 0  ;;  %s1834_s9 = smov (!%p30_p4, %s32_s9), %s1422_s24 }
  0x2f   : > { %1814 = sst [smem:[#allocation11_spill]] %s1832_s8  ;;  %s37_s7 = ssub.s32 %s1418_s23, %s1832_s8 }
  0x30   : > { %s41_s10 = sadd.s32 1, %s1406_s20  ;;  %p34_p9 = scmp.ge.s32.totalorder %s1834_s9, 2 }
  0x31   : > { %p1573_p7 = por %p122_p1, %p48_p5  ;;  %p1577_p10 = por %p49_p8, %p48_p5 }
  0x32   : > { %s220_s11 = sand.u32 1, %s1406_s20   ;;  %s1836_s9 = smov (%p34_p9, %s1834_s9), 0 }
  0x33   : > { %p1213_p11 = scmp.lt.s32.totalorder %s1426_s25, 4  ;;  %s1144_s12 = sshll.u32 %s220_s11, 3 }
  0x34   : > { %s36_s13 = ssub.s32 %s1422_s24, %s1836_s9  ;;  %s1145_s15 = sshll.u32 %s1422_s24, 1 }
  0x35   : > { %s38_s14 = sor.u32 %s37_s7, %s36_s13  ;;  %s229_s16 = sadd.s32 %s1418_s23, %s1145_s15 }
  0x36   : > { %p39_p12 = scmp.eq.s32.totalorder %s38_s14, 0  ;;  %s1146_s17 = sshll.u32 %s229_s16, 7 }
  0x37   : > { %s224_s18 = scalar_lea.vmem [#allocation2], %s1144_s12  ;;  %s1595_s4 = scalar_lea.hbm %s1795_s0, %s1146_s17 }
  0x38   : > { %s233_s30 = sshll.u32 %s224_s18, 4  ;;  %p1603_p13 = pnand %p1213_p11, %p1577_p10  ;;  %s1597_s30 = int_to_ptr.vmem [resolvable:$true] %s233_s30 }
  0x39   : > { %s1590_s1 = scalar_select %p39_p12, %s1406_s20, %s41_s10  }
  0x3a   : > { %s221_s10 = scalar_lea.sflag [#allocation3], %s220_s11  ;;  %s1326_s12 = scalar_lea.hbm %s1595_s4, 128 }
  0x3b   : > { %p1327_p0 = scmp.ne.s32.totalorder %s1595_s4, %s1326_s12  ;;  %p1328_p2 = pneg %p1603_p13 }
  0x3c   : > { %s1331_s26 = scalar_lea.hbm %s1795_s0, 512  ;;  %p1332_p1 = scmp.lt.u32.totalorder %s1595_s4, %s1795_s0 }
  0x3d   : > { %p1329_p3 = pnand %p1328_p2, %p1327_p0  ;;  %p1333_p4 = scmp.lt.u32.totalorder %s1331_s26, %s1326_s12 }
  0x3e   : > { %p1335_p8 = scmp.lt.u32.totalorder %s1326_s12, %s1595_s4 }
  0x3f   : > { %p1330_p6 = pneg %p1329_p3  ;;  %p1334_p5 = por %p1333_p4, %p1332_p1 }
  0x41   : > { %p1336_p9 = por %p1335_p8, %p1334_p5 }
  0x43   : > { %p1337_p10 = pnand %p1336_p9, %p1330_p6 }
  0x45   : > { %1340 = shalt.err (!%p1337_p10)
}
  0x46   : > { %s1341_s11 = scalar_lea.vmem %s1597_s30, 128  ;;  %s1431_s15 = smov [#allocation2]  }
  0x47   : > { %p1342_p11 = scmp.ne.s32.totalorder %s1597_s30, %s1341_s11  ;;  %s1346_s16 = sshll.u32 %s1431_s15, 4  ;;  %s1347_s16 = int_to_ptr.vmem [resolvable:$false] %s1346_s16 }
  0x48   : > { %s1348_s17 = scalar_lea.vmem %s1347_s16, 256  ;;  %p1349_p3 = scmp.lt.s32.totalorder %s1597_s30, %s1347_s16 }
  0x49   : > { %p1344_p12 = pnand %p1342_p11, %p1328_p2  ;;  %p1350_p1 = scmp.lt.s32.totalorder %s1348_s17, %s1341_s11 }
  0x4b   : > { %p1345_p0 = pneg %p1344_p12  ;;  %p1351_p4 = por %p1350_p1, %p1349_p3 }
  0x4d   : > { %p1352_p5 = pnand %p1351_p4, %p1345_p0 }
  0x4f   : > { %1355 = shalt.err (!%p1352_p5)
}
  0x50   : > { %1211 = dma.hbm_to_vmem [thread:$0]  (!%p1603_p13), %s1595_s4, 128, %s1597_s30, %s221_s10  }
  0x51   : > { %p1818_p6 = scmp.ne.s32.totalorder %s1811_s29, 0 }
  0x52   : > { %s1635_s18 = sand.u32 (!%p1818_p6), 1, %s1402_s19   ;;  %p1819_p2 = scmp.ne.s32.totalorder (!%p1818_p6), %s1810_s28, 0 }
  0x53   : > { %242 = sbr.rel (%p1818_p6) target bundleno = 498 (0x1f2), region = 32  ;;  %s1148_s12 = sshll.u32 (!%p1818_p6), %s1635_s18, 3 }
  0x54   : > { %s245_s5 = scalar_lea.sflag (!%p1818_p6), [#allocation3], %s1635_s18  ;;  %s248_s8 = scalar_lea.vmem (!%p1818_p6), [#allocation2], %s1148_s12 }
  0x5a   : > { %1389 = dma.done.wait (%p1819_p2), %s245_s5, 128  }
  0x5b   : > { %1391 = vsyncadd (%p1819_p2), %s245_s5, 4294967168  ;;  %p1820_p8 = scmp.ne.s32.totalorder %s1809_s27, 0 }
  0x5d   : > { %1393 = dma.done.wait (%p1820_p8), [#allocation5], 512  }
  0x5e   : > { %1395 = vsyncadd (%p1820_p8), [#allocation5], 4294966784  ;;  %v1432_v0 = vmov 0.0|0.0   ;;  %vm1433_vm0 = vmmov 0   ;;  %v1434_v1 = vmov 0.0   ;;  %v287_v2 = vld [vmem:[#allocation4] sm:$0xff]  ;;  %v411_v15 = vlaneseq }
  0x5f   : > { %1192 = vmatprep.subr.bf16.mxu0 %v1432_v0  ;;  %1189 = vmatprep.mubr.msk.f32.mxu0 %vm1433_vm0, %v1434_v1  ;;  %v288_v3 = vld [vmem:[#allocation4 + $0x8] sm:$0xff]  ;;  %v289_v4 = vld [vmem:[#allocation4 + $0x10] sm:$0xff]  ;;  %v290_v6 = vld [vmem:[#allocation4 + $0x18] sm:$0xff]  ;;  %vm298_vm1 = vcmask 261120   ;;  %s1435_s28 = smov 104   ;;  %s1436_s29 = smov 120  }
  0x60   : > { %v1193_v5 = vpack.c.bf16 %v288_v3, %v287_v2  ;;  %v1196_v7 = vpack.c.bf16 %v290_v6, %v289_v4  ;;  %v286_v8 = vld [vmem:[%s248_s8] sm:$0xff]  ;;  %s1437_s30 = smov 96   ;;  %s1438_s7 = smov 112   ;;  %v1446_v13 = vmov 1983009808   ;;  %v412_v19 = vshrl.u32 %v411_v15, 7 }
  0x61   : > { %v1153_v9 = vld [vmem:[%s1797_s2] ss:$0 sm:$0xff]  ;;  %s1439_s10 = smov 80   ;;  %s1440_s26 = smov 88   ;;  %v409_v14 = vunpack.c.l.s4 %v1446_v13  ;;  %v1447_v16 = vmov 1934713408  }
  0x62   : > { %1194 = vmatpush3.bf16.msra.mxu0 %v1193_v5  ;;  %s1441_s13 = smov 64   ;;  %s1442_s14 = smov 72   ;;  %v473_v17 = vunpack.c.l.s4 %v1447_v16  ;;  %vm814_vm2 = vcmask 64512  }
  0x63   : > { %1195 = vmatprep.subr.bf16.mxu0 %v1432_v0  ;;  %s1443_s11 = smov 48   ;;  %s1444_s15 = smov 56   ;;  %v410_v18 = vunpack.c.0.s8 %v409_v14 }
  0x64   : > { %s1445_s16 = smov 40   ;;  %v474_v22 = vunpack.c.0.s8 %v473_v17  ;;  %s1671_s17 = sshll.u32 %s1635_s18, 5 }
  0x65   : > { %v1650_v23 = vsub.s32 %v410_v18, %v412_v19  ;;  %s1682_s18 = scalar_lea.vmem [#allocation6], %s1671_s17  ;;  %s1709_s12 = scalar_lea.vmem [#allocation7], %s1671_s17 }
  0x66   : > { %1197 = vmatpush3.bf16.msra.mxu0 %v1196_v7  ;;  %v1652_v30 = vsub.s32 %v474_v22, %v412_v19  ;;  %s1728_s5 = scalar_lea.vmem [#allocation8], %s1671_s17  ;;  %s1168_s8 = sshll.u32 (%p1573_p7), %s1414_s22, 3 }
  0x67   : > { %s843_s4 = sadd.s32 (%p1573_p7), %s1410_s21, %s1168_s8 }
  0x68   : > { %s1169_s27 = sshll.u32 (%p1573_p7), %s843_s4, 3 }
  0x69   : > { %1190 = vmatmul.mubr.msk.f32.vlgmr.msra.gmra.mrb[0].mxu0 %vm298_vm1, %v286_v8 }
 0x13c   : > { %v368_v10 = vpop.f32.mrb[0].mxu0 }
 0x13d   : > { %v369_v11 = vadd.f32 %v1153_v9, %v368_v10  ;;  %v1191_v12 = vpop.f32.mrb[1].mxu0 }
 0x13f   : > { %379 = vrot.lane.b32.xlu1 %v369_v11, %s1435_s28  ;;  %373 = vrot.lane.b32.xlu0 %v369_v11, %s1436_s29 }
 0x143   : > { %382 = vrot.lane.b32.xlu1 %v369_v11, %s1437_s30  ;;  %376 = vrot.lane.b32.xlu0 %v369_v11, %s1438_s7  ;;  %s845_s30 = scalar_lea.vmem (%p1573_p7), %s1798_s3, %s1169_s27 }
 0x147   : > { %388 = vrot.lane.b32.xlu1 %v369_v11, %s1439_s10  ;;  %385 = vrot.lane.b32.xlu0 %v369_v11, %s1440_s26 }
 0x14b   : > { %394 = vrot.lane.b32.xlu1 %v369_v11, %s1441_s13  ;;  %391 = vrot.lane.b32.xlu0 %v369_v11, %s1442_s14 }
 0x14f   : > { %400 = vrot.lane.b32.xlu1 %v369_v11, %s1443_s11  ;;  %397 = vrot.lane.b32.xlu0 %v369_v11, %s1444_s15 }
 0x153   : > { %403 = vrot.lane.b32.xlu0 %v369_v11, %s1445_s16 }
 0x1b1   : > { %v380_v20 = vpop.permute.xlu1 %379  ;;  %v374_v21 = vpop.permute.xlu0 %373 }
 0x1b2   : > { %v422_v24 = vcombine.low %v374_v21, %v380_v20  ;;  %v423_v25 = vcombine.high %v374_v21, %v380_v20 }
 0x1b4   : > { %v430_v31 = vrot.slane %v422_v24, %v1650_v23  ;;  %v437_v32 = vrot.slane %v423_v25, %v1650_v23 }
 0x1b5   : > { %v383_v26 = vpop.permute.xlu1 %382  ;;  %v377_v27 = vpop.permute.xlu0 %376 }
 0x1b6   : > { %v406_v28 = vcombine.low %v369_v11, %v377_v27  ;;  %v407_v29 = vcombine.high %v369_v11, %v377_v27 }
 0x1b8   : > { %v414_v33 = vrot.slane %v406_v28, %v1650_v23  ;;  %v421_v34 = vrot.slane %v407_v29, %v1650_v23 }
 0x1b9   : > { %v389_v35 = vpop.permute.xlu1 %388  ;;  %v386_v36 = vpop.permute.xlu0 %385 }
 0x1ba   : > { %v470_v37 = vcombine.low %v414_v33, %v430_v31  ;;  %v471_v38 = vcombine.high %v414_v33, %v430_v31  ;;  %v486_v39 = vcombine.low %v421_v34, %v437_v32  ;;  %v487_v40 = vcombine.high %v421_v34, %v437_v32 }
 0x1bb   : > { %v438_v45 = vcombine.low %v383_v26, %v389_v35  ;;  %v439_v46 = vcombine.high %v383_v26, %v389_v35 }
 0x1bc   : > { %v478_v41 = vrot.slane %v470_v37, %v1652_v30  ;;  %v485_v42 = vrot.slane %v471_v38, %v1652_v30  ;;  %v494_v43 = vrot.slane %v486_v39, %v1652_v30  ;;  %v501_v44 = vrot.slane %v487_v40, %v1652_v30 }
 0x1bd   : > { %v392_v47 = vpop.permute.xlu0 %391  ;;  %v395_v52 = vpop.permute.xlu1 %394  ;;  %v446_v59 = vrot.slane %v438_v45, %v1650_v23  ;;  %v453_v60 = vrot.slane %v439_v46, %v1650_v23 }
 0x1be   : > { %v1155_v48 = vcombine.low %v478_v41, %v485_v42  ;;  %v1157_v49 = vcombine.high %v478_v41, %v485_v42  ;;  %v1159_v50 = vcombine.low %v494_v43, %v501_v44  ;;  %v1161_v51 = vcombine.high %v494_v43, %v501_v44 }
 0x1bf   : > { %v454_v53 = vcombine.low %v386_v36, %v392_v47  ;;  %v455_v54 = vcombine.high %v386_v36, %v392_v47 }
 0x1c0   : > { %v618_v55 = vrot.slane %v1155_v48, %v1650_v23  ;;  %v634_v56 = vrot.slane %v1157_v49, %v1650_v23  ;;  %v650_v57 = vrot.slane %v1159_v50, %v1650_v23  ;;  %v666_v58 = vrot.slane %v1161_v51, %v1650_v23 }
 0x1c1   : > { %v462_v61 = vrot.slane %v454_v53, %v1650_v23  ;;  %v469_v62 = vrot.slane %v455_v54, %v1650_v23  ;;  %v398_v63 = vpop.permute.xlu0 %397  ;;  %v401_v16 = vpop.permute.xlu1 %400 }
 0x1c2   : > { %v674_v0 = vcombine.low %v618_v55, %v634_v56  ;;  %v675_v1 = vcombine.high %v618_v55, %v634_v56  ;;  %v706_v2 = vcombine.low %v650_v57, %v666_v58  ;;  %v707_v3 = vcombine.high %v650_v57, %v666_v58 }
 0x1c3   : > { %v502_v4 = vcombine.low %v446_v59, %v462_v61  ;;  %v503_v5 = vcombine.high %v446_v59, %v462_v61  ;;  %v518_v6 = vcombine.low %v453_v60, %v469_v62  ;;  %v519_v7 = vcombine.high %v453_v60, %v469_v62 }
 0x1c4   : > { %v682_v8 = vrot.slane %v674_v0, %v1652_v30  ;;  %v689_v9 = vrot.slane %v675_v1, %v1652_v30  ;;  %v714_v10 = vrot.slane %v706_v2, %v1652_v30  ;;  %v721_v11 = vrot.slane %v707_v3, %v1652_v30 }
 0x1c5   : > { %v510_v12 = vrot.slane %v502_v4, %v1652_v30  ;;  %v517_v13 = vrot.slane %v503_v5, %v1652_v30  ;;  %v526_v14 = vrot.slane %v518_v6, %v1652_v30  ;;  %v533_v15 = vrot.slane %v519_v7, %v1652_v30  ;;  %v404_v17 = vpop.permute.xlu0 %403 }
 0x1c6   : > { %v738_v18 = vcombine.low %v682_v8, %v714_v10  ;;  %v739_v19 = vcombine.high %v682_v8, %v714_v10  ;;  %v740_v20 = vcombine.low %v689_v9, %v721_v11  ;;  %v741_v21 = vcombine.high %v689_v9, %v721_v11 }
 0x1c7   : > { %v1156_v22 = vcombine.low %v510_v12, %v517_v13  ;;  %v1158_v24 = vcombine.high %v510_v12, %v517_v13  ;;  %v1160_v25 = vcombine.low %v526_v14, %v533_v15  ;;  %v1162_v26 = vcombine.high %v526_v14, %v533_v15 }
 0x1c8   : > { %815 = vst.msk [vmem:[%s1682_s18] sm:$0xff] %vm814_vm2, %v738_v18  ;;  %816 = vst.msk [vmem:[%s1682_s18 + $0x8] sm:$0xff] %vm814_vm2, %v739_v19  ;;  %v542_v27 = vcombine.low %v395_v52, %v401_v16  ;;  %v543_v28 = vcombine.high %v395_v52, %v401_v16  ;;  %v558_v29 = vcombine.low %v398_v63, %v404_v17 }
 0x1c9   : > { %817 = vst.msk [vmem:[%s1682_s18 + $0x10] sm:$0xff] %vm814_vm2, %v740_v20  ;;  %818 = vst.msk [vmem:[%s1682_s18 + $0x18] sm:$0xff] %vm814_vm2, %v741_v21  ;;  %v559_v31 = vcombine.high %v398_v63, %v404_v17  ;;  %v625_v32 = vrot.slane %v1156_v22, %v1650_v23  ;;  %v641_v33 = vrot.slane %v1158_v24, %v1650_v23 }
 0x1ca   : > { %v657_v34 = vrot.slane %v1160_v25, %v1650_v23  ;;  %v673_v35 = vrot.slane %v1162_v26, %v1650_v23  ;;  %v550_v36 = vrot.slane %v542_v27, %v1650_v23  ;;  %v557_v37 = vrot.slane %v543_v28, %v1650_v23 }
 0x1cb   : > { %v566_v38 = vrot.slane %v558_v29, %v1650_v23  ;;  %v573_v39 = vrot.slane %v559_v31, %v1650_v23  ;;  %v690_v40 = vcombine.low %v625_v32, %v641_v33  ;;  %v691_v41 = vcombine.high %v625_v32, %v641_v33 }
 0x1cc   : > { %v722_v42 = vcombine.low %v657_v34, %v673_v35  ;;  %v723_v43 = vcombine.high %v657_v34, %v673_v35 }
 0x1cd   : > { %v574_v44 = vcombine.low %v550_v36, %v566_v38  ;;  %v575_v45 = vcombine.high %v550_v36, %v566_v38  ;;  %v590_v46 = vcombine.low %v557_v37, %v573_v39  ;;  %v591_v47 = vcombine.high %v557_v37, %v573_v39 }
 0x1ce   : > { %v698_v48 = vrot.slane %v690_v40, %v1652_v30  ;;  %v705_v49 = vrot.slane %v691_v41, %v1652_v30  ;;  %v730_v50 = vrot.slane %v722_v42, %v1652_v30  ;;  %v737_v51 = vrot.slane %v723_v43, %v1652_v30 }
 0x1cf   : > { %v582_v52 = vrot.slane %v574_v44, %v1652_v30  ;;  %v589_v53 = vrot.slane %v575_v45, %v1652_v30  ;;  %v598_v54 = vrot.slane %v590_v46, %v1652_v30  ;;  %v605_v55 = vrot.slane %v591_v47, %v1652_v30 }
 0x1d0   : > { %v742_v56 = vcombine.low %v698_v48, %v730_v50  ;;  %v743_v57 = vcombine.high %v698_v48, %v730_v50  ;;  %v744_v58 = vcombine.low %v705_v49, %v737_v51  ;;  %v745_v59 = vcombine.high %v705_v49, %v737_v51  ;;  %v883_v16 = vld [vmem:[%s1682_s18 + $0x10] sm:$0xff] (%p1573_p7)  ;;  %v885_v17 = vld [vmem:[%s1682_s18 + $0x18] sm:$0xff] (%p1573_p7) }
 0x1d1   : > { %v746_v60 = vcombine.low %v582_v52, %v589_v53  ;;  %v1163_v61 = vcombine.high %v582_v52, %v589_v53  ;;  %v762_v62 = vcombine.low %v598_v54, %v605_v55  ;;  %v1164_v63 = vcombine.high %v598_v54, %v605_v55  ;;  %884 = vst [vmem:[%s845_s30 + $0x20] sm:$0xff] (%p1573_p7), %v883_v16 }
 0x1d2   : > { %819 = vst.msk [vmem:[%s1709_s12] sm:$0xff] %vm814_vm2, %v742_v56  ;;  %820 = vst.msk [vmem:[%s1709_s12 + $0x8] sm:$0xff] %vm814_vm2, %v743_v57 }
 0x1d3   : > { %821 = vst.msk [vmem:[%s1709_s12 + $0x10] sm:$0xff] %vm814_vm2, %v744_v58  ;;  %822 = vst.msk [vmem:[%s1709_s12 + $0x18] sm:$0xff] %vm814_vm2, %v745_v59  ;;  %v753_v0 = vrot.slane %v746_v60, %v1650_v23  ;;  %v761_v1 = vrot.slane %v1163_v61, %v1650_v23  ;;  %v769_v2 = vrot.slane %v762_v62, %v1650_v23 }
 0x1d4   : > { %v777_v3 = vrot.slane %v1164_v63, %v1650_v23  ;;  %v879_v23 = vld [vmem:[%s1682_s18] sm:$0xff] (%p1573_p7)  ;;  %886 = vst [vmem:[%s845_s30 + $0x30] sm:$0xff] (%p1573_p7), %v885_v17 }
 0x1d5   : > { %v778_v4 = vcombine.low %v753_v0, %v761_v1  ;;  %v779_v5 = vcombine.high %v753_v0, %v761_v1  ;;  %880 = vst [vmem:[%s845_s30] sm:$0xff] (%p1573_p7), %v879_v23 }
 0x1d6   : > { %v794_v6 = vcombine.low %v769_v2, %v777_v3  ;;  %v795_v7 = vcombine.high %v769_v2, %v777_v3 }
 0x1d7   : > { %v786_v8 = vrot.slane %v778_v4, %v1652_v30  ;;  %v793_v9 = vrot.slane %v779_v5, %v1652_v30  ;;  %841 = sbr.rel (!%p1573_p7) target bundleno = 478 (0x1de), region = 44 }
 0x1d8   : > { %v802_v10 = vrot.slane %v794_v6, %v1652_v30  ;;  %v809_v11 = vrot.slane %v795_v7, %v1652_v30  ;;  %v881_v30 = vld [vmem:[%s1682_s18 + $0x8] sm:$0xff] (%p1573_p7) }
 0x1d9   : > { %882 = vst [vmem:[%s845_s30 + $0x10] sm:$0xff] (%p1573_p7), %v881_v30 }
 0x1da   : > { %v810_v12 = vcombine.low %v786_v8, %v802_v10  ;;  %v811_v13 = vcombine.high %v786_v8, %v802_v10  ;;  %v812_v14 = vcombine.low %v793_v9, %v809_v11  ;;  %v813_v15 = vcombine.high %v793_v9, %v809_v11 }
 0x1dc   : > { %823 = vst.msk [vmem:[%s1728_s5] sm:$0xff] %vm814_vm2, %v810_v12  ;;  %824 = vst.msk [vmem:[%s1728_s5 + $0x8] sm:$0xff] %vm814_vm2, %v811_v13 }
 0x1dd   : > { %825 = vst.msk [vmem:[%s1728_s5 + $0x10] sm:$0xff] %vm814_vm2, %v812_v14  ;;  %826 = vst.msk [vmem:[%s1728_s5 + $0x18] sm:$0xff] %vm814_vm2, %v813_v15 }
 0x1de PF: > { %892 = sbr.rel (!%p1573_p7) target bundleno = 488 (0x1e8), region = 82  ;;  %s1170_s7 = sshll.u32 (%p1573_p7), %s1414_s22, 3  ;;  %v930_v18 = vld [vmem:[%s1709_s12] sm:$0xff] (%p1573_p7)  ;;  %v932_v19 = vld [vmem:[%s1709_s12 + $0x8] sm:$0xff] (%p1573_p7)  ;;  %v934_v20 = vld [vmem:[%s1709_s12 + $0x10] sm:$0xff] (%p1573_p7) }
 0x1df   : > { %s894_s10 = sadd.s32 (%p1573_p7), %s1410_s21, %s1170_s7  ;;  %v936_v21 = vld [vmem:[%s1709_s12 + $0x18] sm:$0xff] (%p1573_p7)  ;;  %s1821_s11 = sld [smem:[#allocation13_spill]] (%p1573_p7) }
 0x1e0   : > { %s1171_s26 = sshll.u32 (%p1573_p7), %s894_s10, 3 }
 0x1e5   : > { %s896_s15 = scalar_lea.vmem %s1821_s11, %s1171_s26 }
 0x1e6   : > { %931 = vst [vmem:[%s896_s15] sm:$0xff] %v930_v18  ;;  %933 = vst [vmem:[%s896_s15 + $0x10] sm:$0xff] %v932_v19 }
 0x1e7   : > { %935 = vst [vmem:[%s896_s15 + $0x20] sm:$0xff] %v934_v20  ;;  %937 = vst [vmem:[%s896_s15 + $0x30] sm:$0xff] %v936_v21 }
 0x1e8 PF: > { %943 = sbr.rel (!%p1573_p7) target bundleno = 498 (0x1f2), region = 120  ;;  %s1172_s16 = sshll.u32 (%p1573_p7), %s1414_s22, 3  ;;  %v981_v22 = vld [vmem:[%s1728_s5] sm:$0xff] (%p1573_p7)  ;;  %v983_v24 = vld [vmem:[%s1728_s5 + $0x8] sm:$0xff] (%p1573_p7)  ;;  %v985_v25 = vld [vmem:[%s1728_s5 + $0x10] sm:$0xff] (%p1573_p7) }
 0x1e9   : > { %s945_s17 = sadd.s32 (%p1573_p7), %s1410_s21, %s1172_s16  ;;  %v987_v26 = vld [vmem:[%s1728_s5 + $0x18] sm:$0xff] (%p1573_p7)  ;;  %s1822_s4 = sld [smem:[#allocation14_spill]] (%p1573_p7) }
 0x1ea   : > { %s1173_s18 = sshll.u32 (%p1573_p7), %s945_s17, 3 }
 0x1ef   : > { %s947_s27 = scalar_lea.vmem %s1822_s4, %s1173_s18 }
 0x1f0   : > { %982 = vst [vmem:[%s947_s27] sm:$0xff] %v981_v22  ;;  %984 = vst [vmem:[%s947_s27 + $0x10] sm:$0xff] %v983_v24 }
 0x1f1   : > { %986 = vst [vmem:[%s947_s27 + $0x20] sm:$0xff] %v985_v25  ;;  %988 = vst [vmem:[%s947_s27 + $0x30] sm:$0xff] %v987_v26 }
 0x1f2 PF: > { %s20_s25 = sadd.s32 1, %s1426_s25   ;;  %s1823_s6 = sld [smem:[#allocation11_spill]] }
 0x1f3   : > { %p17_p7 = scmp.ge.s32.totalorder %s20_s25, 6   ;;  %s1824_s18 = smov %s1402_s19 }
 0x1f4   : > { %s1825_s19 = smov %s1406_s20  ;;  %s1826_s20 = smov %s1590_s1 }
 0x1f5   : > { %s1827_s21 = smov %s1418_s23  ;;  %s1828_s22 = smov %s1422_s24 }
 0x1f6   : > { %s1830_s24 = smov %s1836_s9  ;;  %19 = sbr.rel (!%p17_p7) target bundleno = 10 (0xa), region = 214 }
 0x1f8   : > { %s1829_s23 = smov %s1823_s6 }
 0x1fd   :  { %1018 = vsyncpa [#allocation3], 1 }
 0x1fe   :  { %1020 = vsyncpa [#allocation3 + $0x1], 1 }
 0x1ff   :  { %1021 = vsyncpa [#allocation5], 1 }

</bundles_post_ra>
